<compile_context>
chip_gen: v7x
topology: tpu7x:2x2x1
jax: 0.10.0
libtpu: 0.0.40
codegen_flags: <defaults>
</compile_context>

<pallas_src>
import jax
import jax.numpy as jnp
from jax.experimental import pallas as pl
from jax.experimental.pallas import tpu as pltpu


def adv_net_kernel(x_ref, w1_ref, b1_ref, w2_ref, b2_ref, w3t_ref, b3_ref, o_ref):
    # Layer 1: Linear + ReLU. Dot operands in bf16 (bf16 MXU path on v6e/v7x,
    # halves operand traffic); accumulate in f32; elementwise kept in f32.
    x_bf = x_ref[...].astype(jnp.bfloat16)
    h1 = jnp.dot(x_bf, w1_ref[...], preferred_element_type=jnp.float32)
    h1 = jnp.maximum(h1 + b1_ref[...], 0.0)

    # Layer 2: Linear + ReLU.  (dropout1/dropout2 are identity in eval mode)
    h2 = jnp.dot(h1.astype(jnp.bfloat16), w2_ref[...],
                 preferred_element_type=jnp.float32)
    h2 = jnp.maximum(h2 + b2_ref[...], 0.0)

    # Layer 3: a (TB, H) @ (H, 1) matmul would waste 255/256 MXU columns and add
    # a full MXU push+pop to the serial chain.  Do it on the VPU/XLU instead:
    # broadcast-multiply by w3^T (1, H) and lane-reduce.
    y = jnp.sum(h2 * w3t_ref[...], axis=-1, keepdims=True) + b3_ref[0, 0]

    # NOTE: the (TB, 1) output store is lane-masked; with F=64 the x read
    # dominates bandwidth, so this is acceptable (see review: secondary).
    o_ref[...] = jax.nn.sigmoid(y).astype(o_ref.dtype)


def adversarial_network_forward(x, w1, b1, w2, b2, w3, b3, *, tile_b=2048):
    """x: (B, F) f32/bf16. w1: (F, H), w2: (H, H), w3: (H, 1); biases (1, H)/(1, 1)."""
    B, F = x.shape
    H = w1.shape[1]

    # Store matmul weights as bf16 in HBM (bandwidth + MXU fast path).
    w1b = w1.astype(jnp.bfloat16)
    w2b = w2.astype(jnp.bfloat16)
    # Third layer runs on the VPU: keep it f32 and pre-transpose to (1, H).
    w3t = jnp.reshape(w3, (1, H)).astype(jnp.float32)
    b1f = b1.reshape(1, H).astype(jnp.float32)
    b2f = b2.reshape(1, H).astype(jnp.float32)
    b3s = jnp.reshape(b3, (1, 1)).astype(jnp.float32)

    # Batch tile: multiple of 8 sublanes, capped by tile_b.  At F=64 an f32 tile
    # of 2048 rows is only 0.5 MiB, so double-buffered x + out + resident weights
    # stay far below v7x's 64 MiB VMEM (and the 32 MiB scoped default).
    TB = min(tile_b, max(8, ((B + 7) // 8) * 8))
    grid = (pl.cdiv(B, TB),)

    resident = lambda i: (0, 0)  # weights/biases stay VMEM-resident across steps

    return pl.pallas_call(
        adv_net_kernel,
        out_shape=jax.ShapeDtypeStruct((B, 1), jnp.float32),
        grid=grid,
        in_specs=[
            pl.BlockSpec((TB, F), lambda i: (i, 0)),       # x: tiled over batch
            pl.BlockSpec((F, H), resident),                # w1 (bf16)
            pl.BlockSpec((1, H), resident),                # b1
            pl.BlockSpec((H, H), resident),                # w2 (bf16)
            pl.BlockSpec((1, H), resident),                # b2
            pl.BlockSpec((1, H), resident),                # w3^T (f32, VPU path)
            pl.BlockSpec(memory_space=pltpu.MemorySpace.SMEM),  # b3 scalar
        ],
        out_specs=pl.BlockSpec((TB, 1), lambda i: (i, 0)),
        compiler_params=pltpu.CompilerParams(
            dimension_semantics=("parallel",),   # 2x on v7x megacore; no-op v5e/v6e
            vmem_limit_bytes=32 * 1024 * 1024,
        ),
    )(x, w1b, b1f, w2b, b2f, w3t, b3s)


def xavier_normal(key, fan_in, fan_out):
    # matches nn.init.xavier_normal_ on a (out, in) torch weight; stored as (in, out)
    std = (2.0 / (fan_in + fan_out)) ** 0.5
    return std * jax.random.normal(key, (fan_in, fan_out), dtype=jnp.float32)


if __name__ == "__main__":
    in_feature = 64
    hidden_size = 32
    batch = 32

    key = jax.random.PRNGKey(0)
    kx, k1, k2, k3 = jax.random.split(key, 4)

    x = jax.random.normal(kx, (batch, in_feature), dtype=jnp.float32)

    # Deterministic init mirroring init_weights(): Linear -> xavier_normal, zero bias.
    w1 = xavier_normal(k1, in_feature, hidden_size)
    b1 = jnp.zeros((1, hidden_size), dtype=jnp.float32)
    w2 = xavier_normal(k2, hidden_size, hidden_size)
    b2 = jnp.zeros((1, hidden_size), dtype=jnp.float32)
    w3 = xavier_normal(k3, hidden_size, 1)
    b3 = jnp.zeros((1, 1), dtype=jnp.float32)

    # tile_b=8 exercises a multi-step batch grid (grid=(4,)) even at demo size;
    # production calls use the default tile_b=2048.
    y = adversarial_network_forward(x, w1, b1, w2, b2, w3, b3, tile_b=8)
    y = jax.block_until_ready(y)

    # Pure-JAX f32 reference.  Kernel uses bf16 matmul operands with f32
    # accumulation, so the tolerance is loosened vs. the original 1e-5.
    h1 = jnp.maximum(x @ w1 + b1, 0.0)
    h2 = jnp.maximum(h1 @ w2 + b2, 0.0)
    y_ref = jax.nn.sigmoid(h2 @ w3 + b3)
    assert y.shape == (batch, 1)
    assert jnp.allclose(y, y_ref, atol=2e-2, rtol=2e-2), float(
        jnp.max(jnp.abs(y - y_ref))
    )

    print("KERNEL_OK")
</pallas_src>

<mosaic_0001>
module attributes {stable_mosaic.version = 11 : i64} {
  func.func @adv_net_kernel(%arg0: i32, %arg1: memref<8x64xf32, #tpu.memory_space<vmem>>, %arg2: memref<64x32xbf16, #tpu.memory_space<vmem>>, %arg3: memref<1x32xf32, #tpu.memory_space<vmem>>, %arg4: memref<32x32xbf16, #tpu.memory_space<vmem>>, %arg5: memref<1x32xf32, #tpu.memory_space<vmem>>, %arg6: memref<1x32xf32, #tpu.memory_space<vmem>>, %arg7: memref<1x1xf32, #tpu.memory_space<smem>>, %arg8: memref<8x1xf32, #tpu.memory_space<vmem>>) attributes {dimension_semantics = [#tpu.dimension_semantics<parallel>], iteration_bounds = array<i64: 4>, scalar_prefetch = 0 : i64, scratch_operands = 0 : i64, tpu.core_type = #tpu.core_type<tc>, window_params = [{transform_indices = @transform_0, window_bounds = array<i64: 8, 64>}, {pipeline_mode = #tpu.pipeline_mode<synchronous>, transform_indices = @transform_1, window_bounds = array<i64: 64, 32>}, {pipeline_mode = #tpu.pipeline_mode<synchronous>, transform_indices = @transform_2, window_bounds = array<i64: 1, 32>}, {pipeline_mode = #tpu.pipeline_mode<synchronous>, transform_indices = @transform_3, window_bounds = array<i64: 32, 32>}, {pipeline_mode = #tpu.pipeline_mode<synchronous>, transform_indices = @transform_4, window_bounds = array<i64: 1, 32>}, {pipeline_mode = #tpu.pipeline_mode<synchronous>, transform_indices = @transform_5, window_bounds = array<i64: 1, 32>}, {transform_indices = @transform_6, window_bounds = array<i64: 1, 1>}, {transform_indices = @transform_7, window_bounds = array<i64: 8, 1>}]} {
    %c0 = arith.constant 0 : index
    %c0_0 = arith.constant 0 : index
    %0 = vector.load %arg1[%c0, %c0_0] : memref<8x64xf32, #tpu.memory_space<vmem>>, vector<8x64xf32>
    %1 = arith.truncf %0 : vector<8x64xf32> to vector<8x64xbf16>
    %c0_1 = arith.constant 0 : index
    %c0_2 = arith.constant 0 : index
    %2 = vector.load %arg2[%c0_1, %c0_2] : memref<64x32xbf16, #tpu.memory_space<vmem>>, vector<64x32xbf16>
    %cst = arith.constant dense<0.000000e+00> : vector<8x32xf32>
    %3 = tpu.matmul %1, %2, %cst {dimension_numbers = #tpu.dot_dimension_numbers<[1], [0], [0], [1], [0, 0, 1, 1], [], []>} : vector<8x64xbf16>, vector<64x32xbf16>, vector<8x32xf32> -> vector<8x32xf32>
    %c0_3 = arith.constant 0 : index
    %c0_4 = arith.constant 0 : index
    %4 = vector.load %arg3[%c0_3, %c0_4] : memref<1x32xf32, #tpu.memory_space<vmem>>, vector<1x32xf32>
    %5 = vector.broadcast %4 : vector<1x32xf32> to vector<8x32xf32>
    %6 = arith.addf %3, %5 : vector<8x32xf32>
    %cst_5 = arith.constant 0.000000e+00 : f32
    %7 = vector.broadcast %cst_5 : f32 to vector<8x32xf32>
    %8 = arith.maximumf %6, %7 : vector<8x32xf32>
    %9 = arith.truncf %8 : vector<8x32xf32> to vector<8x32xbf16>
    %c0_6 = arith.constant 0 : index
    %c0_7 = arith.constant 0 : index
    %10 = vector.load %arg4[%c0_6, %c0_7] : memref<32x32xbf16, #tpu.memory_space<vmem>>, vector<32x32xbf16>
    %cst_8 = arith.constant dense<0.000000e+00> : vector<8x32xf32>
    %11 = tpu.matmul %9, %10, %cst_8 {dimension_numbers = #tpu.dot_dimension_numbers<[1], [0], [0], [1], [0, 0, 1, 1], [], []>} : vector<8x32xbf16>, vector<32x32xbf16>, vector<8x32xf32> -> vector<8x32xf32>
    %c0_9 = arith.constant 0 : index
    %c0_10 = arith.constant 0 : index
    %12 = vector.load %arg5[%c0_9, %c0_10] : memref<1x32xf32, #tpu.memory_space<vmem>>, vector<1x32xf32>
    %13 = vector.broadcast %12 : vector<1x32xf32> to vector<8x32xf32>
    %14 = arith.addf %11, %13 : vector<8x32xf32>
    %cst_11 = arith.constant 0.000000e+00 : f32
    %15 = vector.broadcast %cst_11 : f32 to vector<8x32xf32>
    %16 = arith.maximumf %14, %15 : vector<8x32xf32>
    %c0_12 = arith.constant 0 : index
    %c0_13 = arith.constant 0 : index
    %17 = vector.load %arg6[%c0_12, %c0_13] : memref<1x32xf32, #tpu.memory_space<vmem>>, vector<1x32xf32>
    %18 = vector.broadcast %17 : vector<1x32xf32> to vector<8x32xf32>
    %19 = arith.mulf %16, %18 : vector<8x32xf32>
    %cst_14 = arith.constant dense<0.000000e+00> : vector<8xf32>
    %20 = vector.multi_reduction <add>, %19, %cst_14 [1] : vector<8x32xf32> to vector<8xf32>
    %21 = vector.shape_cast %20 : vector<8xf32> to vector<8x1xf32>
    %c0_15 = arith.constant 0 : index
    %c0_16 = arith.constant 0 : index
    %22 = memref.load %arg7[%c0_15, %c0_16] : memref<1x1xf32, #tpu.memory_space<smem>>
    %23 = vector.broadcast %22 : f32 to vector<8x1xf32>
    %24 = arith.addf %21, %23 : vector<8x1xf32>
    %25 = arith.negf %24 : vector<8x1xf32>
    %26 = math.exp %25 : vector<8x1xf32>
    %cst_17 = arith.constant 1.000000e+00 : f32
    %27 = vector.broadcast %cst_17 : f32 to vector<8x1xf32>
    %28 = arith.addf %27, %26 : vector<8x1xf32>
    %29 = arith.divf %27, %28 : vector<8x1xf32>
    %c0_18 = arith.constant 0 : index
    %c0_19 = arith.constant 0 : index
    %30 = vector.load %arg8[%c0_18, %c0_19] : memref<8x1xf32, #tpu.memory_space<vmem>>, vector<8x1xf32>
    tpu.vector_store %arg8[%c0_18, %c0_19], %29 {strides = array<i32>} : memref<8x1xf32, #tpu.memory_space<vmem>>, vector<8x1xf32>,
    return
  }
  func.func @transform_0(%arg0: i32) -> (i32, i32) {
    %c0_i32 = arith.constant 0 : i32
    %c0_i32_0 = arith.constant 0 : i32
    return %arg0, %c0_i32 : i32, i32
  }
  func.func @transform_1(%arg0: i32) -> (i32, i32) {
    %c0_i32 = arith.constant 0 : i32
    %c0_i32_0 = arith.constant 0 : i32
    %c0_i32_1 = arith.constant 0 : i32
    return %c0_i32, %c0_i32_0 : i32, i32
  }
  func.func @transform_2(%arg0: i32) -> (i32, i32) {
    %c0_i32 = arith.constant 0 : i32
    %c0_i32_0 = arith.constant 0 : i32
    %c0_i32_1 = arith.constant 0 : i32
    return %c0_i32, %c0_i32_0 : i32, i32
  }
  func.func @transform_3(%arg0: i32) -> (i32, i32) {
    %c0_i32 = arith.constant 0 : i32
    %c0_i32_0 = arith.constant 0 : i32
    %c0_i32_1 = arith.constant 0 : i32
    return %c0_i32, %c0_i32_0 : i32, i32
  }
  func.func @transform_4(%arg0: i32) -> (i32, i32) {
    %c0_i32 = arith.constant 0 : i32
    %c0_i32_0 = arith.constant 0 : i32
    %c0_i32_1 = arith.constant 0 : i32
    return %c0_i32, %c0_i32_0 : i32, i32
  }
  func.func @transform_5(%arg0: i32) -> (i32, i32) {
    %c0_i32 = arith.constant 0 : i32
    %c0_i32_0 = arith.constant 0 : i32
    %c0_i32_1 = arith.constant 0 : i32
    return %c0_i32, %c0_i32_0 : i32, i32
  }
  func.func @transform_6(%arg0: i32) -> (i32, i32) {
    %c0_i32 = arith.constant 0 : i32
    %c0_i32_0 = arith.constant 0 : i32
    %c0_i32_1 = arith.constant 0 : i32
    return %c0_i32, %c0_i32_0 : i32, i32
  }
  func.func @transform_7(%arg0: i32) -> (i32, i32) {
    %c0_i32 = arith.constant 0 : i32
    %c0_i32_0 = arith.constant 0 : i32
    return %arg0, %c0_i32 : i32, i32
  }
}

</mosaic_0001>

<bundles_post_ra>
// kernel: tpu_custom_call.1
= control target key start
LH: loop header
LB: loop body
LE: loop exit
PB: predicated region body
PF: predicated region fallthrough
CT: control target
= control target key end

     0   :  { %s628_s26 = smov 0   ;;  %s679_s0 = inlined_call_operand.vmem [shape: f32[32,64], index: 0, kind: input, shape index: {}]   ;;  %s680_s1 = inlined_call_operand.vmem [shape: bf16[64,32], index: 1, kind: input, shape index: {}]   ;;  %s681_s2 = inlined_call_operand.vmem [shape: f32[1,32], index: 2, kind: input, shape index: {}]   ;;  %s682_s3 = inlined_call_operand.vmem [shape: bf16[32,32], index: 3, kind: input, shape index: {}]   ;;  %s683_s4 = inlined_call_operand.vmem [shape: f32[1,32], index: 4, kind: input, shape index: {}]   ;;  %s684_s5 = inlined_call_operand.vmem [shape: f32[1,32], index: 5, kind: input, shape index: {}]   ;;  %s685_s6 = inlined_call_operand.<no memory space> [shape: f32[1,1], index: 6, kind: input, shape index: {}]   ;;  %s686_s7 = inlined_call_operand.vmem [shape: f32[32,1], index: 7, kind: output, shape index: {}]  }
   0x1   :  { %12 = sst [smem:[#allocation2]] %s685_s6 }
   0x2 LB: > { %s506_s27 = sadd.s32 4294967295, %s581_s26   ;;  %p510_p0 = scmp.ge.s32.totalorder %s581_s26, 1  ;;  %s581_s26 = sphi %s628_s26, %s18_s26  }
   0x3   : > { %p237_p1 = scmp.lt.s32.totalorder %s581_s26, 5 }
   0x5   : > { %p238_p2 = pnand %p510_p0, %p237_p1 }
   0x6   : > { %v565_v0 = vld [vmem:[%s680_s1] sm:$0xff] (!%p238_p2)   ;;  %v583_v1 = vmov (!%p238_p2), 0.0   ;;  %v566_v2 = vld [vmem:[%s680_s1 + $0x8] sm:$0xff] (!%p238_p2)   ;;  %vm584_vm0 = vmmov (!%p238_p2), 0   ;;  %p267_p3 = scmp.lt.s32.totalorder (!%p238_p2), %s506_s27, 3  ;;  %v567_v3 = vld [vmem:[%s680_s1 + $0x10] sm:$0xff] (!%p238_p2)  }
   0x7   : > { %241 = sbr.rel (%p238_p2) target bundleno = 631 (0x277), region = 48  ;;  %535 = vmatprep.subr.bf16.mxu0 (!%p238_p2), %v583_v1  ;;  %547 = vmatprep.subr.bf16.mxu1 (!%p238_p2), %v583_v1  ;;  %v568_v4 = vld [vmem:[%s680_s1 + $0x18] sm:$0xff] (!%p238_p2)   ;;  %vm317_vm1 = vcmask (!%p238_p2), 523264   ;;  %v569_v7 = vld [vmem:[%s682_s3] sm:$0xff] (!%p238_p2)   ;;  %v570_v8 = vld [vmem:[%s682_s3 + $0x8] sm:$0xff] (!%p238_p2)   ;;  %vm386_vm2 = vcmask (!%p238_p2), 261120  }
   0x8   : > { %536 = vmatpush3.bf16.msra.mxu0 (!%p238_p2), %v565_v0  ;;  %543 = vmatprep.mubr.msk.bf16.mxu0 (!%p238_p2), %vm584_vm0, %v583_v1  ;;  %v513_v9 = vld [vmem:[%s681_s2] ss:$0 sm:$0xff] (!%p238_p2)  ;;  %s442_s28 = sld [smem:[#allocation2]] (!%p238_p2)  ;;  %vm451_vm3 = vcmask (!%p238_p2), 7168  }
   0x9   : > { %537 = vmatprep.subr.bf16.mxu0 (!%p238_p2), %v583_v1  ;;  %551 = vmatprep.mubr.msk.bf16.mxu1 (!%p238_p2), %vm584_vm0, %v583_v1  ;;  %v519_v17 = vld [vmem:[%s683_s4] ss:$0 sm:$0xff] (!%p238_p2) }
   0xa   : > { %548 = vmatpush3.bf16.msra.mxu1 (!%p238_p2), %v569_v7  ;;  %v523_v22 = vld [vmem:[%s684_s5] ss:$0 sm:$0xff] (!%p238_p2) }
   0xb   : > { %549 = vmatprep.subr.bf16.mxu1 (!%p238_p2), %v583_v1 }
   0xc   : > { %538 = vmatpush3.bf16.msra.mxu0 (!%p238_p2), %v566_v2 }
   0xd   : > { %539 = vmatprep.subr.bf16.mxu0 (!%p238_p2), %v583_v1 }
   0xe   : > { %s688_s27 = smov (!%p267_p3, %s506_s27), 3  ;;  %550 = vmatpush3.bf16.msra.mxu1 %v570_v8  ;;  %v443_v27 = vstv %s442_s28 }
   0xf   : > { %s511_s10 = sshll.u32 %s688_s27, 3 }
  0x10   : > { %s270_s13 = scalar_lea.vmem %s679_s0, %s511_s10  ;;  %540 = vmatpush3.bf16.msra.mxu0 %v567_v3  ;;  %s274_s30 = scalar_lea.vmem %s686_s7, %s511_s10 }
  0x11   : > { %v276_v5 = vld [vmem:[%s270_s13] sm:$0xff]  ;;  %541 = vmatprep.subr.bf16.mxu0 %v583_v1 }
  0x12   : > { %v277_v6 = vpack.c.bf16 %v276_v5, %v276_v5 }
  0x14   : > { %542 = vmatpush3.bf16.msra.mxu0 %v568_v4 }
  0x17   : > { %544 = vmatmul.mubr.msk.bf16.vlgmr.msra.gmra.mrb[0].mxu0 %vm317_vm1, %v277_v6 }
  0xea   : > { %v355_v10 = vpop.f32.mrb[0].mxu0 }
  0xeb   : > { %v356_v11 = vadd.f32 %v513_v9, %v355_v10  ;;  %v545_v12 = vpop.f32.mrb[1].mxu0 }
  0xec   : > { %v358_v13 = vpop.f32.mrb[2].mxu0 }
  0xed   : > { %v361_v14 = vmax.f32 %v356_v11, 0.0  ;;  %v546_v15 = vpop.f32.mrb[3].mxu0 }
  0xef   : > { %v362_v16 = vpack.c.bf16 %v361_v14, %v361_v14 }
  0xf1   : > { %552 = vmatmul.mubr.msk.bf16.vlgmr.msra.gmra.mrb[0].mxu1 %vm386_vm2, %v362_v16 }
 0x1c4   : > { %v424_v18 = vpop.f32.mrb[0].mxu1 }
 0x1c5   : > { %v425_v19 = vadd.f32 %v519_v17, %v424_v18  ;;  %v553_v20 = vpop.f32.mrb[1].mxu1 }
 0x1c6   : > { %v427_v21 = vpop.f32.mrb[2].mxu1 }
 0x1c7   : > { %v430_v23 = vmax.f32 %v425_v19, 0.0  ;;  %v554_v24 = vpop.f32.mrb[3].mxu1 }
 0x1c9   : > { %v438_v25 = vmul.f32 %v523_v22, %v430_v23 }
 0x1cb   : > { %v439_v26 = vsel %vm386_vm2, %v438_v25, 0.0 }
 0x1cc   : > { %440 = vadd.xlane.f32.xlu0 %v439_v26 }
 0x259   : > { %v441_v28 = vpop.xlane.xlu0 %440 }
 0x25a   : > { %v444_v29 = vadd.f32 %v443_v27, %v441_v28 }
 0x25c   : > { %v524_v30 = vmul.f32 -1.442695, %v444_v29 }
 0x25e   : > { %571 = vpow2.f32 %v524_v30 }
 0x268   : > { %v572_v31 = vpop.eup %571 }
 0x269   : > { %v448_v32 = vadd.f32 1.0, %v572_v31 }
 0x26b   : > { %573 = vrcp.f32 %v448_v32 }
 0x275   : > { %v574_v33 = vpop.eup %573 }
 0x276   : > { %452 = vst.msk [vmem:[%s274_s30] sm:$0xff] %vm451_vm3, %v574_v33 }
 0x277 PF: > { %s18_s26 = sadd.s32 1, %s581_s26  }
 0x278   : > { %p15_p4 = scmp.ge.s32.totalorder %s18_s26, 6  }
 0x27a   :  { %17 = sbr.rel (!%p15_p4) target bundleno = 2 (0x2), region = 78 }

</bundles_post_ra>
